<compile_context>
chip_gen: v5e
topology: v5e:2x2
jax: 0.10.0
libtpu: 0.0.40
codegen_flags: <defaults>
</compile_context>

<pallas_src>
import functools

import jax
import jax.numpy as jnp
import numpy as np
from jax.experimental import pallas as pl
from jax.experimental.pallas import tpu as pltpu

_VMEM_LIMIT_BYTES = 48 * 1024 * 1024


def _round_up(x, m):
    return -(-x // m) * m


# ----------------------------------------------------------------------------
# Fused kernel: whole (C, HW) image resident per grid step.
# ----------------------------------------------------------------------------
def _fused_se_kernel(x_ref, wr_ref, br_ref, we_ref, be_ref, o_ref, *, inv_hw):
    x = x_ref[0]                                                  # (C, HW)
    # Global average pool: single cross-lane reduce (f32 accumulation).
    m = jnp.sum(x.astype(jnp.float32), axis=1, keepdims=True) * inv_hw   # (C, 1)
    # se_reduce (1x1 conv): (Cs, C) @ (C, 1) -> (Cs, 1), then Swish.
    r = jnp.dot(wr_ref[...], m, preferred_element_type=jnp.float32) + br_ref[...]
    r = r * jax.nn.sigmoid(r)
    # se_excite (1x1 conv): (C, Cs) @ (Cs, 1) -> (C, 1), then Sigmoid.
    e = jnp.dot(we_ref[...], r, preferred_element_type=jnp.float32) + be_ref[...]
    e = jax.nn.sigmoid(e)
    # Channel-wise rescale, broadcast across lanes; multiply in input dtype.
    o_ref[0] = (x * e.astype(x.dtype)).astype(o_ref.dtype)


# ----------------------------------------------------------------------------
# Two-pass fallback, pass 1: tiled global-average-pool + excite MLP.
# ----------------------------------------------------------------------------
def _pool_excite_kernel(x_ref, wr_ref, br_ref, we_ref, be_ref, e_ref, acc_ref,
                        *, hw, thw, inv_hw):
    j = pl.program_id(1)

    @pl.when(j == 0)
    def _():
        acc_ref[...] = jnp.zeros_like(acc_ref)

    x = x_ref[0].astype(jnp.float32)                              # (C, thw)
    if hw % thw != 0:
        # Ragged last tile: zero the lanes past the true H*W extent.
        lane = jax.lax.broadcasted_iota(jnp.int32, x.shape, 1)
        x = jnp.where(j * thw + lane < hw, x, 0.0)
    acc_ref[...] += x                                             # per-lane VPU adds

    @pl.when(j == pl.num_programs(1) - 1)
    def _():
        m = jnp.sum(acc_ref[...], axis=1, keepdims=True) * inv_hw     # (C, 1)
        r = jnp.dot(wr_ref[...], m, preferred_element_type=jnp.float32) + br_ref[...]
        r = r * jax.nn.sigmoid(r)                                     # Swish
        e = jnp.dot(we_ref[...], r, preferred_element_type=jnp.float32) + be_ref[...]
        e_ref[0] = jax.nn.sigmoid(e).astype(e_ref.dtype)              # (C, 1)


# ----------------------------------------------------------------------------
# Two-pass fallback, pass 2: channel-wise rescale (lane-dense stores).
# ----------------------------------------------------------------------------
def _scale_kernel(x_ref, e_ref, o_ref):
    x = x_ref[...]                                   # (1, C, thw)
    e = e_ref[...].astype(x.dtype)                   # (1, C, 1) -> lane broadcast
    o_ref[...] = (x * e).astype(o_ref.dtype)


def _pick_spatial_tile(hw, c_pad, budget_bytes):
    """Largest multiple-of-128 spatial tile whose *padded* f32 block
    (c_pad x thw x 4B) stays under budget; full H*W if it already fits."""
    bytes_per_lane = c_pad * 4                        # f32 accumulator worst case
    if hw <= 128 or hw * bytes_per_lane <= budget_bytes:
        return hw
    t = (budget_bytes // bytes_per_lane) // 128 * 128
    return int(max(128, min(t, hw)))


def squeeze_and_excitation(x_nchw, w_reduce, b_reduce, w_excite, b_excite, *,
                           fused_max_bytes=6 * 1024 * 1024,
                           block_budget_bytes=4 * 1024 * 1024):
    """SqueezeAndExcitation forward.

    x_nchw   : (N, C, H, W)
    w_reduce : (Cs, C, 1, 1)  se_reduce Conv2d weight (PyTorch layout)
    b_reduce : (Cs,)          se_reduce bias
    w_excite : (C, Cs, 1, 1)  se_excite Conv2d weight
    b_excite : (C,)           se_excite bias
    """
    n, c, h, w = x_nchw.shape
    hw = h * w
    cs = w_reduce.shape[0]

    wr = w_reduce.reshape(cs, c).astype(jnp.float32)      # (Cs, C)
    br = b_reduce.reshape(cs, 1).astype(jnp.float32)      # (Cs, 1)
    we = w_excite.reshape(c, cs).astype(jnp.float32)      # (C, Cs)
    be = b_excite.reshape(c, 1).astype(jnp.float32)       # (C, 1)

    x3 = x_nchw.reshape(n, c, hw)                         # free view of NCHW

    c_pad = _round_up(c, 8)
    hw_pad = _round_up(hw, 128)
    padded_img_f32 = c_pad * hw_pad * 4

    cp_fused = pltpu.CompilerParams(
        dimension_semantics=("parallel",), vmem_limit_bytes=_VMEM_LIMIT_BYTES)
    cp_pool = pltpu.CompilerParams(
        dimension_semantics=("parallel", "arbitrary"),
        vmem_limit_bytes=_VMEM_LIMIT_BYTES)
    cp_scale = pltpu.CompilerParams(
        dimension_semantics=("parallel", "parallel"),
        vmem_limit_bytes=_VMEM_LIMIT_BYTES)

    if padded_img_f32 <= fused_max_bytes:
        # ---- Fused per-image-resident path: 1 read + 1 write of x.
        y = pl.pallas_call(
            functools.partial(_fused_se_kernel, inv_hw=1.0 / float(hw)),
            out_shape=jax.ShapeDtypeStruct((n, c, hw), x_nchw.dtype),
            grid=(n,),
            in_specs=[
                pl.BlockSpec((1, c, hw), lambda i: (i, 0, 0)),
                pl.BlockSpec((cs, c), lambda i: (0, 0)),
                pl.BlockSpec((cs, 1), lambda i: (0, 0)),
                pl.BlockSpec((c, cs), lambda i: (0, 0)),
                pl.BlockSpec((c, 1), lambda i: (0, 0)),
            ],
            out_specs=pl.BlockSpec((1, c, hw), lambda i: (i, 0, 0)),
            compiler_params=cp_fused,
        )(x3, wr, br, we, be)
    else:
        # ---- Two-pass fallback for large images.
        thw = _pick_spatial_tile(hw, c_pad, block_budget_bytes)
        n_tiles = pl.cdiv(hw, thw)

        pool_kernel = functools.partial(
            _pool_excite_kernel, hw=hw, thw=thw, inv_hw=1.0 / float(hw))
        e = pl.pallas_call(
            pool_kernel,
            out_shape=jax.ShapeDtypeStruct((n, c, 1), jnp.float32),
            grid=(n, n_tiles),
            in_specs=[
                pl.BlockSpec((1, c, thw), lambda i, j: (i, 0, j)),
                pl.BlockSpec((cs, c), lambda i, j: (0, 0)),
                pl.BlockSpec((cs, 1), lambda i, j: (0, 0)),
                pl.BlockSpec((c, cs), lambda i, j: (0, 0)),
                pl.BlockSpec((c, 1), lambda i, j: (0, 0)),
            ],
            out_specs=pl.BlockSpec((1, c, 1), lambda i, j: (i, 0, 0)),
            scratch_shapes=[pltpu.VMEM((c, thw), jnp.float32)],
            compiler_params=cp_pool,
        )(x3, wr, br, we, be)

        y = pl.pallas_call(
            _scale_kernel,
            out_shape=jax.ShapeDtypeStruct((n, c, hw), x_nchw.dtype),
            grid=(n, n_tiles),
            in_specs=[
                pl.BlockSpec((1, c, thw), lambda i, j: (i, 0, j)),
                pl.BlockSpec((1, c, 1), lambda i, j: (i, 0, 0)),
            ],
            out_specs=pl.BlockSpec((1, c, thw), lambda i, j: (i, 0, j)),
            compiler_params=cp_scale,
        )(x3, e)

    return y.reshape(n, c, h, w)


# ----------------------------------------------------------------------------
# Pure-JAX reference (same math as the PyTorch module).
# ----------------------------------------------------------------------------
def ref_forward(x_nchw, w_reduce, b_reduce, w_excite, b_excite):
    xf = x_nchw.astype(jnp.float32)
    cs, c = w_reduce.shape[0], w_reduce.shape[1]
    m = jnp.mean(xf, axis=(2, 3))                                # (N, C)
    r = m @ w_reduce.reshape(cs, c).T + b_reduce                 # se_reduce
    r = r * jax.nn.sigmoid(r)                                    # Swish
    e = jax.nn.sigmoid(r @ w_excite.reshape(c, cs).T + b_excite) # se_excite
    return (xf * e[:, :, None, None]).astype(x_nchw.dtype)


# ----------------------------------------------------------------------------
# Deterministic parameter construction (PyTorch Conv2d weight layouts).
# ----------------------------------------------------------------------------
def make_params(key, channel, squeeze_channel, se_ratio):
    sq = squeeze_channel * se_ratio
    if not float(sq).is_integer():
        raise ValueError("channels must be divisible by 1/se_ratio")
    sq = int(sq)
    k1, k2, k3, k4 = jax.random.split(key, 4)
    w_reduce = 0.2 * jax.random.normal(k1, (sq, channel, 1, 1), jnp.float32)
    b_reduce = 0.1 * jax.random.normal(k2, (sq,), jnp.float32)
    w_excite = 0.2 * jax.random.normal(k3, (channel, sq, 1, 1), jnp.float32)
    b_excite = 0.1 * jax.random.normal(k4, (channel,), jnp.float32)
    return w_reduce, b_reduce, w_excite, b_excite


if __name__ == "__main__":
    # SqueezeAndExcitation(channel=16, squeeze_channel=16, se_ratio=0.25)
    channel, squeeze_channel, se_ratio = 16, 16, 0.25

    key = jax.random.PRNGKey(0)
    kx, kp = jax.random.split(key)
    x = jax.random.normal(kx, (2, channel, 16, 16), jnp.float32)   # NCHW input
    params = make_params(kp, channel, squeeze_channel, se_ratio)

    # Default (fused per-image-resident) path.
    out = squeeze_and_excitation(x, *params)
    out = jax.block_until_ready(out)
    ref = ref_forward(x, *params)
    np.testing.assert_allclose(np.asarray(out), np.asarray(ref),
                               rtol=1e-4, atol=1e-4)
    assert out.shape == x.shape

    # Also exercise the two-pass fallback with a ragged last spatial tile.
    x2 = jax.random.normal(jax.random.PRNGKey(1),
                           (1, channel, 33, 33), jnp.float32)      # HW = 1089
    out2 = squeeze_and_excitation(x2, *params, fused_max_bytes=0,
                                  block_budget_bytes=16 * 1024)
    out2 = jax.block_until_ready(out2)
    ref2 = ref_forward(x2, *params)
    np.testing.assert_allclose(np.asarray(out2), np.asarray(ref2),
                               rtol=1e-4, atol=1e-4)
    assert out2.shape == x2.shape

    print("KERNEL_OK")
</pallas_src>

<mosaic_0001>
module attributes {stable_mosaic.version = 11 : i64} {
  func.func @_fused_se_kernel(%arg0: i32, %arg1: memref<1x16x256xf32, #tpu.memory_space<vmem>>, %arg2: memref<4x16xf32, #tpu.memory_space<vmem>>, %arg3: memref<4x1xf32, #tpu.memory_space<vmem>>, %arg4: memref<16x4xf32, #tpu.memory_space<vmem>>, %arg5: memref<16x1xf32, #tpu.memory_space<vmem>>, %arg6: memref<1x16x256xf32, #tpu.memory_space<vmem>>) attributes {dimension_semantics = [#tpu.dimension_semantics<parallel>], iteration_bounds = array<i64: 2>, scalar_prefetch = 0 : i64, scratch_operands = 0 : i64, tpu.core_type = #tpu.core_type<tc>, window_params = [{transform_indices = @transform_0, window_bounds = array<i64: 1, 16, 256>}, {pipeline_mode = #tpu.pipeline_mode<synchronous>, transform_indices = @transform_1, window_bounds = array<i64: 4, 16>}, {pipeline_mode = #tpu.pipeline_mode<synchronous>, transform_indices = @transform_2, window_bounds = array<i64: 4, 1>}, {pipeline_mode = #tpu.pipeline_mode<synchronous>, transform_indices = @transform_3, window_bounds = array<i64: 16, 4>}, {pipeline_mode = #tpu.pipeline_mode<synchronous>, transform_indices = @transform_4, window_bounds = array<i64: 16, 1>}, {transform_indices = @transform_5, window_bounds = array<i64: 1, 16, 256>}]} {
    %c0 = arith.constant 0 : index
    %c0_0 = arith.constant 0 : index
    %c0_1 = arith.constant 0 : index
    %0 = vector.load %arg1[%c0, %c0_0, %c0_1] : memref<1x16x256xf32, #tpu.memory_space<vmem>>, vector<1x16x256xf32>
    %1 = vector.shape_cast %0 : vector<1x16x256xf32> to vector<16x256xf32>
    %cst = arith.constant dense<0.000000e+00> : vector<16xf32>
    %2 = vector.multi_reduction <add>, %1, %cst [1] : vector<16x256xf32> to vector<16xf32>
    %3 = vector.shape_cast %2 : vector<16xf32> to vector<16x1xf32>
    %cst_2 = arith.constant 3.906250e-03 : f32
    %4 = vector.broadcast %cst_2 : f32 to vector<16x1xf32>
    %5 = arith.mulf %3, %4 : vector<16x1xf32>
    %c0_3 = arith.constant 0 : index
    %c0_4 = arith.constant 0 : index
    %6 = vector.load %arg2[%c0_3, %c0_4] : memref<4x16xf32, #tpu.memory_space<vmem>>, vector<4x16xf32>
    %cst_5 = arith.constant dense<0.000000e+00> : vector<4x1xf32>
    %7 = tpu.matmul %6, %5, %cst_5 {dimension_numbers = #tpu.dot_dimension_numbers<[1], [0], [0], [1], [0, 0, 1, 1], [], []>} : vector<4x16xf32>, vector<16x1xf32>, vector<4x1xf32> -> vector<4x1xf32>
    %c0_6 = arith.constant 0 : index
    %c0_7 = arith.constant 0 : index
    %8 = vector.load %arg3[%c0_6, %c0_7] : memref<4x1xf32, #tpu.memory_space<vmem>>, vector<4x1xf32>
    %9 = arith.addf %7, %8 : vector<4x1xf32>
    %10 = arith.negf %9 : vector<4x1xf32>
    %11 = math.exp %10 : vector<4x1xf32>
    %cst_8 = arith.constant 1.000000e+00 : f32
    %12 = vector.broadcast %cst_8 : f32 to vector<4x1xf32>
    %13 = arith.addf %12, %11 : vector<4x1xf32>
    %14 = arith.divf %12, %13 : vector<4x1xf32>
    %15 = arith.mulf %9, %14 : vector<4x1xf32>
    %c0_9 = arith.constant 0 : index
    %c0_10 = arith.constant 0 : index
    %16 = vector.load %arg4[%c0_9, %c0_10] : memref<16x4xf32, #tpu.memory_space<vmem>>, vector<16x4xf32>
    %cst_11 = arith.constant dense<0.000000e+00> : vector<16x1xf32>
    %17 = tpu.matmul %16, %15, %cst_11 {dimension_numbers = #tpu.dot_dimension_numbers<[1], [0], [0], [1], [0, 0, 1, 1], [], []>} : vector<16x4xf32>, vector<4x1xf32>, vector<16x1xf32> -> vector<16x1xf32>
    %c0_12 = arith.constant 0 : index
    %c0_13 = arith.constant 0 : index
    %18 = vector.load %arg5[%c0_12, %c0_13] : memref<16x1xf32, #tpu.memory_space<vmem>>, vector<16x1xf32>
    %19 = arith.addf %17, %18 : vector<16x1xf32>
    %20 = arith.negf %19 : vector<16x1xf32>
    %21 = math.exp %20 : vector<16x1xf32>
    %cst_14 = arith.constant 1.000000e+00 : f32
    %22 = vector.broadcast %cst_14 : f32 to vector<16x1xf32>
    %23 = arith.addf %22, %21 : vector<16x1xf32>
    %24 = arith.divf %22, %23 : vector<16x1xf32>
    %25 = vector.broadcast %24 : vector<16x1xf32> to vector<16x256xf32>
    %26 = arith.mulf %1, %25 : vector<16x256xf32>
    %c0_15 = arith.constant 0 : index
    %c0_16 = arith.constant 0 : index
    %c0_17 = arith.constant 0 : index
    %27 = vector.load %arg6[%c0_15, %c0_16, %c0_17] : memref<1x16x256xf32, #tpu.memory_space<vmem>>, vector<1x16x256xf32>
    %28 = vector.shape_cast %27 : vector<1x16x256xf32> to vector<16x256xf32>
    %29 = vector.shape_cast %26 : vector<16x256xf32> to vector<1x16x256xf32>
    tpu.vector_store %arg6[%c0_15, %c0_16, %c0_17], %29 {strides = array<i32>} : memref<1x16x256xf32, #tpu.memory_space<vmem>>, vector<1x16x256xf32>,
    return
  }
  func.func @transform_0(%arg0: i32) -> (i32, i32, i32) {
    %c0_i32 = arith.constant 0 : i32
    %c0_i32_0 = arith.constant 0 : i32
    %c0_i32_1 = arith.constant 0 : i32
    return %arg0, %c0_i32, %c0_i32_0 : i32, i32, i32
  }
  func.func @transform_1(%arg0: i32) -> (i32, i32) {
    %c0_i32 = arith.constant 0 : i32
    %c0_i32_0 = arith.constant 0 : i32
    %c0_i32_1 = arith.constant 0 : i32
    return %c0_i32, %c0_i32_0 : i32, i32
  }
  func.func @transform_2(%arg0: i32) -> (i32, i32) {
    %c0_i32 = arith.constant 0 : i32
    %c0_i32_0 = arith.constant 0 : i32
    %c0_i32_1 = arith.constant 0 : i32
    return %c0_i32, %c0_i32_0 : i32, i32
  }
  func.func @transform_3(%arg0: i32) -> (i32, i32) {
    %c0_i32 = arith.constant 0 : i32
    %c0_i32_0 = arith.constant 0 : i32
    %c0_i32_1 = arith.constant 0 : i32
    return %c0_i32, %c0_i32_0 : i32, i32
  }
  func.func @transform_4(%arg0: i32) -> (i32, i32) {
    %c0_i32 = arith.constant 0 : i32
    %c0_i32_0 = arith.constant 0 : i32
    %c0_i32_1 = arith.constant 0 : i32
    return %c0_i32, %c0_i32_0 : i32, i32
  }
  func.func @transform_5(%arg0: i32) -> (i32, i32, i32) {
    %c0_i32 = arith.constant 0 : i32
    %c0_i32_0 = arith.constant 0 : i32
    %c0_i32_1 = arith.constant 0 : i32
    return %arg0, %c0_i32, %c0_i32_0 : i32, i32, i32
  }
}

</mosaic_0001>

<bundles_post_ra>
// kernel: tpu_custom_call.1
= control target key start
LH: loop header
LB: loop body
LE: loop exit
PB: predicated region body
PF: predicated region fallthrough
CT: control target
= control target key end

     0   :  { %10 = vsyncpa [#allocation3], 0  ;;  %s873_s0 = inlined_call_operand.hbm [shape: f32[2,16,256], index: 0, kind: input, shape index: {}]   ;;  %s874_s1 = inlined_call_operand.vmem [shape: f32[4,16], index: 1, kind: input, shape index: {}]   ;;  %s875_s2 = inlined_call_operand.vmem [shape: f32[4,1], index: 2, kind: input, shape index: {}]   ;;  %s876_s3 = inlined_call_operand.vmem [shape: f32[16,4], index: 3, kind: input, shape index: {}]   ;;  %s877_s4 = inlined_call_operand.vmem [shape: f32[16,1], index: 4, kind: input, shape index: {}]   ;;  %s878_s5 = inlined_call_operand.hbm [shape: f32[2,16,256], index: 5, kind: output, shape index: {}]  }
   0x1   :  { %12 = vsyncpa [#allocation3 + $0x1], 0 }
   0x2   :  { %13 = vsyncpa [#allocation4], 0 }
   0x3   :  { %15 = vsyncpa [#allocation4 + $0x1], 0  ;;  %s708_s18 = smov 0   ;;  %s710_s19 = smov 0  }
   0x4   :  { %s712_s20 = smov 0   ;;  %s714_s21 = smov 0  }
   0x5 LB: > { %s729_s22 = sadd.s32 4294967295, %s671_s21   ;;  %s486_s23 = sadd.s32 4294967294, %s671_s21   ;;  %s671_s21 = sphi %s714_s21, %s888_s21   ;;  %s667_s20 = sphi %s712_s20, %s887_s20   ;;  %s663_s19 = sphi %s710_s19, %s886_s19   ;;  %s659_s18 = sphi %s708_s18, %s885_s18  }
   0x6   : > { %s733_s24 = sadd.s32 1, %s671_s21   ;;  %s28_s25 = sadd.s32 1, %s667_s20 }
   0x7   : > { %s25_s26 = ssub.s32 %s671_s21, %s733_s24  ;;  %p35_p0 = scmp.ne.s32.totalorder %s667_s20, %s663_s19 }
   0x8   : > { %p26_p1 = scmp.eq.s32.totalorder %s25_s26, 0  ;;  %p36_p2 = scmp.eq.s32.totalorder %s671_s21, 0 }
   0x9   : > { %p41_p3 = scmp.ne.s32.totalorder %s663_s19, %s659_s18  ;;  %p42_p4 = scmp.eq.s32.totalorder %s729_s22, 0 }
   0xa   : > { %s745_s27 = scalar_select %p26_p1, %s667_s20, %s28_s25  }
   0xb   : > { %p747_p5 = por %p36_p2, %p35_p0  ;;  %p751_p6 = por %p42_p4, %p41_p3 }
   0xc   : > { %p149_p7 = scmp.eq.s32.totalorder %s729_s22, 1  ;;  %p155_p8 = scmp.eq.s32.totalorder %s486_s23, 1 }
   0xd   : > { %p522_p10 = scmp.lt.s32.totalorder %s671_s21, 2  ;;  %s187_s7 = sand.u32 1, %s667_s20  }
   0xe   : > { %p758_p11 = por %p149_p7, %p35_p0  ;;  %p762_p12 = por %p155_p8, %p41_p3 }
   0xf   : > { %s507_s8 = sshll.u32 %s671_s21, 5  ;;  %s489_s9 = sshll.u32 %s187_s7, 5 }
  0x10   : > { %s196_s12 = scalar_lea.hbm %s873_s0, %s507_s8  ;;  %s191_s14 = scalar_lea.vmem [#allocation2], %s489_s9 }
  0x11   : > { %s197_s13 = sshll.u32 %s196_s12, 4  ;;  %s199_s15 = sshll.u32 %s191_s14, 4  ;;  %s198_s13 = int_to_ptr.hbm [resolvable:$true] %s197_s13  ;;  %s200_s15 = int_to_ptr.vmem [resolvable:$true] %s199_s15 }
  0x12   : > { %p773_p13 = pnand %p522_p10, %p747_p5  ;;  %p492_p0 = scmp.ge.s32.totalorder %s671_s21, 1 }
  0x13   : > { %p207_p1 = scmp.lt.s32.totalorder %s671_s21, 3  ;;  %s188_s17 = scalar_lea.sflag [#allocation3], %s187_s7 }
  0x14   : > { %s575_s23 = sshra.s32 %s198_s13, 4  ;;  %p579_p3 = pneg %p773_p13  ;;  %s576_s23 = int_to_ptr.hbm [resolvable:$true] %s575_s23 }
  0x15   : > { %s577_s25 = scalar_lea.hbm %s576_s23, 32  ;;  %s582_s28 = scalar_lea.hbm %s873_s0, 64 }
  0x16   : > { %p578_p2 = scmp.ne.s32.totalorder %s576_s23, %s577_s25  ;;  %p583_p5 = scmp.lt.s32.totalorder %s576_s23, %s873_s0 }
  0x17   : > { %p584_p8 = scmp.lt.s32.totalorder %s582_s28, %s577_s25 }
  0x18   : > { %p580_p4 = pnand %p579_p3, %p578_p2 }
  0x19   : > { %p585_p10 = por %p584_p8, %p583_p5 }
  0x1a   : > { %p581_p7 = pneg %p580_p4 }
  0x1c   : > { %p586_p9 = pnand %p585_p10, %p581_p7 }
  0x1e   : > { %589 = shalt.err (!%p586_p9)
}
  0x1f   : > { %s673_s7 = smov 256   ;;  %s674_s11 = smov 16  }
  0x20   : > { %517 = dma.hbm_to_vmem [thread:$0]  (!%p773_p13), %s198_s13, 512, %s200_s15, %s188_s17, %s673_s7, %s673_s7, %s674_s11  }
  0x21   : > { %p208_p2 = pnand %p492_p0, %p207_p1 }
  0x22   : > { %s794_s12 = sand.u32 (!%p208_p2), 1, %s663_s19  }
  0x23   : > { %211 = sbr.rel (%p208_p2) target bundleno = 616 (0x268), region = 40  ;;  %s493_s14 = sshll.u32 (!%p208_p2), %s794_s12, 5 }
  0x24   : > { %s214_s23 = scalar_lea.sflag (!%p208_p2), [#allocation3], %s794_s12  ;;  %s217_s25 = scalar_lea.vmem (!%p208_p2), [#allocation2], %s493_s14 }
  0x28   : > { %650 = dma.done.wait (%p751_p6), %s214_s23, 512  }
  0x29   : > { %652 = vsyncadd (%p751_p6), %s214_s23, 4294966784  ;;  %v804_v0 = vld [vmem:[%s217_s25 + $0x10] sm:$0xff]  ;;  %v806_v1 = vld [vmem:[%s217_s25 + $0x18] sm:$0xff]  ;;  %vm259_vm0 = vcmask 130048   ;;  %vm314_vm5 = vcmask 1043456   ;;  %vm307_vm6 = vcmask 31744  }
  0x2a   : > { %v252_v2 = vadd.f32 %v806_v1, %v804_v0  ;;  %v810_v3 = vld [vmem:[%s217_s25] sm:$0xff]  ;;  %v812_v4 = vld [vmem:[%s217_s25 + $0x8] sm:$0xff]  ;;  %v675_v30 = vmov 0   ;;  %s508_s23 = sshll.u32 %s729_s22, 5  ;;  %s244_s25 = scalar_lea.vmem [#allocation5], %s493_s14 }
  0x2b   : > { %v249_v5 = vadd.f32 %v812_v4, %v810_v3  ;;  %v257_v10 = vld [vmem:[%s874_s1] sm:$0xf]  ;;  %v304_v29 = vld [vmem:[%s876_s3 + $0x8] sm:$0xff]  ;;  %561 = vset.pattern.permute.xlu1 %v675_v30  ;;  %562 = vset.pattern.permute.xlu0 %v675_v30  ;;  %s409_s15 = scalar_lea.hbm %s878_s5, %s508_s23  ;;  %s410_s16 = sshll.u32 %s244_s25, 4  ;;  %s411_s16 = int_to_ptr.vmem [resolvable:$true] %s410_s16 }
  0x2c   : > { %253 = vadd.xlane.f32.xlu0 %v252_v2  ;;  %v258_v11 = vld [vmem:[%s875_s2] sm:$0xf]  ;;  %v306_v35 = vld [vmem:[%s877_s4 + $0x8] sm:$0xff]  ;;  %s412_s17 = sshll.u32 %s409_s15, 4  ;;  %s398_s22 = scalar_lea.sflag [#allocation4], %s794_s12  ;;  %s413_s17 = int_to_ptr.hbm [resolvable:$true] %s412_s17 }
  0x2d   : > { %v303_v28 = vld [vmem:[%s876_s3] sm:$0xff]  ;;  %s619_s14 = sshra.s32 %s413_s17, 4  ;;  %s625_s9 = scalar_lea.hbm %s878_s5, 64  ;;  %s620_s14 = int_to_ptr.hbm [resolvable:$true] %s619_s14 }
  0x2e   : > { %v305_v31 = vld [vmem:[%s877_s4] sm:$0xff]  ;;  %s621_s26 = scalar_lea.hbm %s620_s14, 32  ;;  %p626_p0 = scmp.lt.s32.totalorder %s620_s14, %s878_s5 }
  0x2f   : > { %p622_p6 = scmp.ne.s32.totalorder %s620_s14, %s621_s26  ;;  %p627_p1 = scmp.lt.s32.totalorder %s625_s9, %s621_s26 }
  0x31   : > { %p623_p9 = pnand %p622_p6, %p758_p11  ;;  %p628_p3 = por %p627_p1, %p626_p0 }
  0x33   : > { %p624_p13 = pneg %p623_p9 }
  0x34   : > { %250 = vadd.xlane.f32.xlu0 %v249_v5 }
  0x35   : > { %p629_p4 = pnand %p628_p3, %p624_p13 }
  0x9f   : > { %v254_v6 = vpop.xlane.xlu0 %253 }
  0xa0   : > { %v256_v7 = vmul.f32 0.00390625, %v254_v6 }
  0xa2   : > { %277 = vmatpush.msra.mxu0 %v256_v7 }
  0xa7   : > { %v251_v8 = vpop.xlane.xlu0 %250 }
  0xa8   : > { %v255_v9 = vmul.f32 0.00390625, %v251_v8 }
  0xaa   : > { %278 = vmatpush.msra.mxu0 %v255_v9 }
  0xab   : > { %495 = vmatmul.msk.f32.vlgmr.msra.gmra.mxu0 %vm259_vm0, %v257_v10 }
 0x128   : > { %v280_v12 = vpop.f32.mrf.mxu0 }
 0x129   : > { %v281_v13 = vadd.f32 %v280_v12, %v258_v11 }
 0x12b   : > { %v496_v14 = vmul.f32 -1.442695, %v281_v13 }
 0x12d   : > { %563 = vpow2.f32 %v496_v14 }
 0x133   : > { %v564_v15 = vpop.eup %563 }
 0x134   : > { %v286_v16 = vadd.f32 1.0, %v564_v15 }
 0x136   : > { %565 = vrcp.f32 %v286_v16  ;;  %v298_v20 = vand.u32 2147483648, %v286_v16  ;;  %v296_v22 = vand.u32 2147483647, %v286_v16  ;;  %vm292_vm2 = vweird.f32 %v286_v16 }
 0x138   : > { %v299_v24 = vor.u32 1.1754944e-38, %v298_v20  ;;  %vm297_vm4 = vcmp.eq.f32.partialorder %v296_v22, 8.507059e+37 }
 0x13c   : > { %v566_v17 = vpop.eup %565 }
 0x13d   : > { %v288_v18 = vmul.f32 %v566_v17, %v286_v16  ;;  %vm293_vm1 = vweird.f32 %v566_v17 }
 0x13e   : > { %vm294_vm3 = vmor %vm292_vm2, %vm293_vm1 }
 0x13f   : > { %v289_v19 = vsub.f32 1.0, %v288_v18 }
 0x141   : > { %v290_v21 = vmul.f32 %v566_v17, %v289_v19 }
 0x143   : > { %v291_v23 = vadd.f32 %v566_v17, %v290_v21 }
 0x145   : > { %v295_v25 = vsel %vm294_vm3, %v566_v17, %v291_v23 }
 0x146   : > { %v300_v26 = vsel %vm297_vm4, %v299_v24, %v295_v25 }
 0x147   : > { %v302_v27 = vmul.f32 %v300_v26, %v281_v13 }
 0x149   : > { %497 = vmatpush.msk.msra.mxu1 %vm314_vm5, %v302_v27  ;;  %509 = vmatpush.msk.msra.mxu2 %vm314_vm5, %v302_v27 }
 0x14a   : > { %498 = vmatmul.msk.f32.vlgmr.msra.gmra.mxu1 %vm307_vm6, %v303_v28  ;;  %499 = vmatmul.msk.f32.vlgmr.msra.gmra.mxu2 %vm307_vm6, %v304_v29 }
 0x1c7   : > { %v335_v32 = vpop.f32.mrf.mxu1 }
 0x1c8   : > { %v336_v33 = vadd.f32 %v335_v32, %v305_v31 }
 0x1ca   : > { %v500_v34 = vmul.f32 -1.442695, %v336_v33 }
 0x1cc   : > { %567 = vpow2.f32 %v500_v34 }
 0x1cd   : > { %v338_v36 = vpop.f32.mrf.mxu2 }
 0x1ce   : > { %v339_v37 = vadd.f32 %v338_v36, %v306_v35 }
 0x1d0   : > { %v501_v38 = vmul.f32 -1.442695, %v339_v37 }
 0x1d2   : > { %v568_v39 = vpop.eup %567  ;;  %569 = vpow2.f32 %v501_v38 }
 0x1d3   : > { %v347_v40 = vadd.f32 1.0, %v568_v39 }
 0x1d5   : > { %571 = vrcp.f32 %v347_v40  ;;  %v360_v46 = vand.u32 2147483648, %v347_v40  ;;  %v358_v48 = vand.u32 2147483647, %v347_v40  ;;  %vm354_vm8 = vweird.f32 %v347_v40 }
 0x1d7   : > { %v361_v52 = vor.u32 1.1754944e-38, %v360_v46  ;;  %vm359_vm10 = vcmp.eq.f32.partialorder %v358_v48, 8.507059e+37 }
 0x1d8   : > { %v570_v41 = vpop.eup %569 }
 0x1d9   : > { %v348_v42 = vadd.f32 1.0, %v570_v41 }
 0x1db   : > { %v572_v43 = vpop.eup %571  ;;  %573 = vrcp.f32 %v348_v42  ;;  %v375_v57 = vand.u32 2147483648, %v348_v42  ;;  %vm369_vm12 = vweird.f32 %v348_v42  ;;  %v373_v59 = vand.u32 2147483647, %v348_v42 }
 0x1dc   : > { %v350_v44 = vmul.f32 %v572_v43, %v347_v40  ;;  %vm355_vm7 = vweird.f32 %v572_v43 }
 0x1dd   : > { %vm356_vm9 = vmor %vm354_vm8, %vm355_vm7  ;;  %v376_v61 = vor.u32 1.1754944e-38, %v375_v57  ;;  %vm374_vm14 = vcmp.eq.f32.partialorder %v373_v59, 8.507059e+37 }
 0x1de   : > { %v351_v45 = vsub.f32 1.0, %v350_v44 }
 0x1e0   : > { %v352_v47 = vmul.f32 %v572_v43, %v351_v45 }
 0x1e1   : > { %v574_v49 = vpop.eup %573 }
 0x1e2   : > { %v353_v50 = vadd.f32 %v572_v43, %v352_v47  ;;  %v365_v51 = vmul.f32 %v574_v49, %v348_v42  ;;  %vm370_vm11 = vweird.f32 %v574_v49 }
 0x1e3   : > { %vm371_vm13 = vmor %vm369_vm12, %vm370_vm11 }
 0x1e4   : > { %v357_v53 = vsel %vm356_vm9, %v572_v43, %v353_v50  ;;  %v366_v54 = vsub.f32 1.0, %v365_v51 }
 0x1e5   : > { %v362_v55 = vsel %vm359_vm10, %v361_v52, %v357_v53 }
 0x1e6   : > { %381 = vperm.xlu1 %561, %v362_v55   ;;  %v367_v56 = vmul.f32 %v574_v49, %v366_v54 }
 0x1e8   : > { %v368_v58 = vadd.f32 %v574_v49, %v367_v56 }
 0x1ea   : > { %v372_v60 = vsel %vm371_vm13, %v574_v49, %v368_v58 }
 0x1eb   : > { %v377_v62 = vsel %vm374_vm14, %v376_v61, %v372_v60 }
 0x1ee   : > { %386 = vperm.xlu1 %561, %v377_v62  }
 0x258   : > { %v382_v63 = vpop.permute.xlu1 %381 }
 0x259   : > { %v389_v2 = vmul.f32 %v382_v63, %v810_v3  ;;  %v390_v5 = vmul.f32 %v382_v63, %v812_v4 }
 0x25b   : > { %393 = vst [vmem:[%s244_s25] sm:$0xff] %v389_v2 }
 0x25c   : > { %394 = vst [vmem:[%s244_s25 + $0x8] sm:$0xff] %v390_v5 }
 0x260   : > { %v387_v6 = vpop.permute.xlu1 %386 }
 0x261   : > { %v391_v7 = vmul.f32 %v387_v6, %v804_v0  ;;  %v392_v8 = vmul.f32 %v387_v6, %v806_v1 }
 0x263   : > { %395 = vst [vmem:[%s244_s25 + $0x10] sm:$0xff] %v391_v7 }
 0x264   : > { %396 = vst [vmem:[%s244_s25 + $0x18] sm:$0xff] %v392_v8 }
 0x265   : > { %632 = shalt.err (!%p629_p4)
}
 0x266   : > { %s676_s12 = smov 256   ;;  %s677_s11 = smov 16  }
 0x267   : > { %512 = dma.vmem_to_hbm [thread:$0]  (%p758_p11), %s411_s16, 512, %s413_s17, %s398_s22, %s676_s12, %s676_s12, %s677_s11  }
 0x268 PF: > { %s427_s23 = sand.u32 1, %s659_s18   ;;  %p884_p7 = scmp.ge.s32.totalorder %s671_s21, 2 }
 0x269   : > { %s428_s25 = scalar_lea.sflag [#allocation4], %s427_s23 }
 0x26a   : > { %p519_p5 = pnand %p884_p7, %p762_p12 }
 0x26c   : > { %p520_p8 = pneg %p519_p5 }
 0x26e   : > { %654 = dma.done.wait (%p520_p8), %s428_s25, 512  }
 0x26f   : > { %656 = vsyncadd (%p520_p8), %s428_s25, 4294966784  ;;  %p18_p10 = scmp.ge.s32.totalorder %s733_s24, 4   ;;  %s885_s18 = smov %s663_s19 }
 0x270   : > { %s886_s19 = smov %s667_s20  ;;  %s887_s20 = smov %s745_s27 }
 0x271   : > { %s888_s21 = smov %s733_s24  ;;  %20 = sbr.rel (!%p18_p10) target bundleno = 5 (0x5), region = 85 }
 0x276   :  { %434 = vsyncpa [#allocation3], 1 }
 0x277   :  { %436 = vsyncpa [#allocation3 + $0x1], 1 }
 0x278   :  { %437 = vsyncpa [#allocation4], 1 }
 0x279   :  { %439 = vsyncpa [#allocation4 + $0x1], 1 }

</bundles_post_ra>
